<compile_context>
chip_gen: v7x
topology: tpu7x:2x2x1
jax: 0.10.0
libtpu: 0.0.40
codegen_flags: <defaults>
</compile_context>

<pallas_src>
import jax
import jax.numpy as jnp
from jax import lax
from jax.experimental import pallas as pl
from jax.experimental.pallas import tpu as pltpu

EPS = 1e-6  # matches the module's self.eps = 1e-06


def _layernorm_kernel(x_ref, w_ref, b_ref, o_ref):
    # x_ref: (C, t_hw) block -- channels on sublanes, spatial on lanes.
    # w_ref/b_ref: (C, 1) per-channel affine parameters.
    x = x_ref[...].astype(jnp.float32)
    inv_c = jnp.float32(1.0 / x.shape[0])
    # Single-pass stats: both cross-sublane reductions are independent (XLU).
    s1 = jnp.sum(x, axis=0, keepdims=True)          # (1, t_hw)
    s2 = jnp.sum(x * x, axis=0, keepdims=True)      # (1, t_hw)
    mu = s1 * inv_c
    # Biased variance (matches .pow(2).mean()); clamp guards fp cancellation.
    var = jnp.maximum(s2 * inv_c - mu * mu, 0.0)
    inv = lax.rsqrt(var + EPS)                      # EUP slot, effectively free
    y = (x - mu) * inv
    o_ref[...] = (w_ref[...].astype(jnp.float32) * y
                  + b_ref[...].astype(jnp.float32)).astype(o_ref.dtype)


def _pick_t_hw(hw, target=8192):
    # Largest lane-dense chunk (multiple of 128) that divides hw, capped at
    # `target` lanes so double-buffered in+out tiles stay far under the
    # scoped-VMEM limits of all generations (v5e 16 MiB / v7x 32 MiB defaults).
    # If hw is not 128-aligned, the full extent is always a legal block dim.
    if hw % 128 != 0:
        return hw
    t = min(hw, target)
    t -= t % 128
    while hw % t != 0:
        t -= 128
    return t


@jax.jit
def layer_norm_nchw(x, weight, bias):
    """LayerNorm over dim=1 of an NCHW tensor; weight/bias shaped (1, C, 1, 1)."""
    N, C, H, W = x.shape
    HW = H * W
    t_hw = _pick_t_hw(HW)

    # Free views: NCHW is contiguous in (N, C, H*W); no transpose / pad needed.
    x3d = x.reshape(N, C, HW)
    w2d = weight.reshape(C, 1)
    b2d = bias.reshape(C, 1)

    grid = (N, HW // t_hw)  # >= 2 iterations in practice -> shards across TCs on v7x
    out3d = pl.pallas_call(
        _layernorm_kernel,
        out_shape=jax.ShapeDtypeStruct((N, C, HW), x.dtype),
        grid_spec=pltpu.PrefetchScalarGridSpec(
            num_scalar_prefetch=0,
            grid=grid,
            in_specs=[
                pl.BlockSpec((None, C, t_hw), lambda n, j: (n, 0, j)),
                pl.BlockSpec((C, 1), lambda n, j: (0, 0)),
                pl.BlockSpec((C, 1), lambda n, j: (0, 0)),
            ],
            out_specs=pl.BlockSpec((None, C, t_hw), lambda n, j: (n, 0, j)),
        ),
        compiler_params=pltpu.CompilerParams(
            dimension_semantics=("parallel", "parallel")),
    )(x3d, w2d, b2d)
    return out3d.reshape(N, C, H, W)


def _reference(x, weight, bias):
    mu = jnp.mean(x, axis=1, keepdims=True)
    s = jnp.mean((x - mu) ** 2, axis=1, keepdims=True)
    xn = (x - mu) / jnp.sqrt(s + EPS)
    return weight * xn + bias


if __name__ == "__main__":
    key = jax.random.PRNGKey(0)
    kx, kw, kb = jax.random.split(key, 3)

    N, C, H, W = 2, 7, 16, 16  # module default: shape=(1, 7, 1, 1), dim=1
    x = jax.random.normal(kx, (N, C, H, W), dtype=jnp.float32)
    # Module initializes weight=ones, bias=zeros; perturb deterministically so
    # the affine path is exercised.
    weight = jnp.ones((1, C, 1, 1), jnp.float32) + 0.1 * jax.random.normal(kw, (1, C, 1, 1))
    bias = jnp.zeros((1, C, 1, 1), jnp.float32) + 0.1 * jax.random.normal(kb, (1, C, 1, 1))

    out = layer_norm_nchw(x, weight, bias)
    out = jax.block_until_ready(out)

    ref = _reference(x, weight, bias)
    assert out.shape == (N, C, H, W)
    assert jnp.allclose(out, ref, atol=1e-4, rtol=1e-4)
    print("KERNEL_OK")
</pallas_src>

<mosaic_0001>
module attributes {stable_mosaic.version = 11 : i64} {
  func.func @_layernorm_kernel(%arg0: i32, %arg1: i32, %arg2: memref<1x7x256xf32, #tpu.memory_space<vmem>>, %arg3: memref<7x1xf32, #tpu.memory_space<vmem>>, %arg4: memref<7x1xf32, #tpu.memory_space<vmem>>, %arg5: memref<1x7x256xf32, #tpu.memory_space<vmem>>) attributes {dimension_semantics = [#tpu.dimension_semantics<parallel>, #tpu.dimension_semantics<parallel>], iteration_bounds = array<i64: 2, 1>, scalar_prefetch = 0 : i64, scratch_operands = 0 : i64, tpu.core_type = #tpu.core_type<tc>, window_params = [{transform_indices = @transform_0, window_bounds = array<i64: 1, 7, 256>}, {pipeline_mode = #tpu.pipeline_mode<synchronous>, transform_indices = @transform_1, window_bounds = array<i64: 7, 1>}, {pipeline_mode = #tpu.pipeline_mode<synchronous>, transform_indices = @transform_2, window_bounds = array<i64: 7, 1>}, {transform_indices = @transform_3, window_bounds = array<i64: 1, 7, 256>}]} {
    %c0 = arith.constant 0 : index
    %c0_0 = arith.constant 0 : index
    %c0_1 = arith.constant 0 : index
    %0 = vector.load %arg2[%c0, %c0_0, %c0_1] : memref<1x7x256xf32, #tpu.memory_space<vmem>>, vector<1x7x256xf32>
    %1 = vector.shape_cast %0 : vector<1x7x256xf32> to vector<7x256xf32>
    %cst = arith.constant dense<0.000000e+00> : vector<256xf32>
    %2 = vector.multi_reduction <add>, %1, %cst [0] : vector<7x256xf32> to vector<256xf32>
    %3 = vector.shape_cast %2 : vector<256xf32> to vector<1x256xf32>
    %4 = arith.mulf %1, %1 : vector<7x256xf32>
    %cst_2 = arith.constant dense<0.000000e+00> : vector<256xf32>
    %5 = vector.multi_reduction <add>, %4, %cst_2 [0] : vector<7x256xf32> to vector<256xf32>
    %6 = vector.shape_cast %5 : vector<256xf32> to vector<1x256xf32>
    %cst_3 = arith.constant 0.142857149 : f32
    %7 = vector.broadcast %cst_3 : f32 to vector<1x256xf32>
    %8 = arith.mulf %3, %7 : vector<1x256xf32>
    %cst_4 = arith.constant 0.142857149 : f32
    %9 = vector.broadcast %cst_4 : f32 to vector<1x256xf32>
    %10 = arith.mulf %6, %9 : vector<1x256xf32>
    %11 = arith.mulf %8, %8 : vector<1x256xf32>
    %12 = arith.subf %10, %11 : vector<1x256xf32>
    %cst_5 = arith.constant 0.000000e+00 : f32
    %13 = vector.broadcast %cst_5 : f32 to vector<1x256xf32>
    %14 = arith.maximumf %12, %13 : vector<1x256xf32>
    %cst_6 = arith.constant 9.99999997E-7 : f32
    %15 = vector.broadcast %cst_6 : f32 to vector<1x256xf32>
    %16 = arith.addf %14, %15 : vector<1x256xf32>
    %17 = math.rsqrt %16 : vector<1x256xf32>
    %18 = vector.broadcast %8 : vector<1x256xf32> to vector<7x256xf32>
    %19 = arith.subf %1, %18 : vector<7x256xf32>
    %20 = vector.broadcast %17 : vector<1x256xf32> to vector<7x256xf32>
    %21 = arith.mulf %19, %20 : vector<7x256xf32>
    %c0_7 = arith.constant 0 : index
    %c0_8 = arith.constant 0 : index
    %22 = vector.load %arg3[%c0_7, %c0_8] : memref<7x1xf32, #tpu.memory_space<vmem>>, vector<7x1xf32>
    %23 = vector.broadcast %22 : vector<7x1xf32> to vector<7x256xf32>
    %24 = arith.mulf %23, %21 : vector<7x256xf32>
    %c0_9 = arith.constant 0 : index
    %c0_10 = arith.constant 0 : index
    %25 = vector.load %arg4[%c0_9, %c0_10] : memref<7x1xf32, #tpu.memory_space<vmem>>, vector<7x1xf32>
    %26 = vector.broadcast %25 : vector<7x1xf32> to vector<7x256xf32>
    %27 = arith.addf %24, %26 : vector<7x256xf32>
    %c0_11 = arith.constant 0 : index
    %c0_12 = arith.constant 0 : index
    %c0_13 = arith.constant 0 : index
    %28 = vector.load %arg5[%c0_11, %c0_12, %c0_13] : memref<1x7x256xf32, #tpu.memory_space<vmem>>, vector<1x7x256xf32>
    %29 = vector.shape_cast %28 : vector<1x7x256xf32> to vector<7x256xf32>
    %30 = vector.shape_cast %27 : vector<7x256xf32> to vector<1x7x256xf32>
    tpu.vector_store %arg5[%c0_11, %c0_12, %c0_13], %30 {strides = array<i32>} : memref<1x7x256xf32, #tpu.memory_space<vmem>>, vector<1x7x256xf32>,
    return
  }
  func.func @transform_0(%arg0: i32, %arg1: i32) -> (i32, i32, i32) {
    %c0_i32 = arith.constant 0 : i32
    %c0_i32_0 = arith.constant 0 : i32
    return %arg0, %c0_i32, %arg1 : i32, i32, i32
  }
  func.func @transform_1(%arg0: i32, %arg1: i32) -> (i32, i32) {
    %c0_i32 = arith.constant 0 : i32
    %c0_i32_0 = arith.constant 0 : i32
    %c0_i32_1 = arith.constant 0 : i32
    return %c0_i32, %c0_i32_0 : i32, i32
  }
  func.func @transform_2(%arg0: i32, %arg1: i32) -> (i32, i32) {
    %c0_i32 = arith.constant 0 : i32
    %c0_i32_0 = arith.constant 0 : i32
    %c0_i32_1 = arith.constant 0 : i32
    return %c0_i32, %c0_i32_0 : i32, i32
  }
  func.func @transform_3(%arg0: i32, %arg1: i32) -> (i32, i32, i32) {
    %c0_i32 = arith.constant 0 : i32
    %c0_i32_0 = arith.constant 0 : i32
    return %arg0, %c0_i32, %arg1 : i32, i32, i32
  }
}

</mosaic_0001>

<bundles_post_ra>
// kernel: layer_norm_nchw.1
= control target key start
LH: loop header
LB: loop body
LE: loop exit
PB: predicated region body
PF: predicated region fallthrough
CT: control target
= control target key end

     0   :  { %s454_s12 = smov 0   ;;  %s456_s13 = smov 0   ;;  %s500_s0 = inlined_call_operand.vmem [shape: f32[2,7,256], index: 0, kind: input, shape index: {}]   ;;  %s501_s1 = inlined_call_operand.vmem [shape: f32[7,1], index: 1, kind: input, shape index: {}]   ;;  %s502_s2 = inlined_call_operand.vmem [shape: f32[7,1], index: 2, kind: input, shape index: {}]   ;;  %s503_s3 = inlined_call_operand.vmem [shape: f32[2,7,256], index: 3, kind: output, shape index: {}]  }
   0x1   :  { %s458_s14 = smov 0  }
   0x2 LB: > { %s25_s15 = sadd.s32 1, %s427_s13  ;;  %p370_p0 = scmp.ge.s32.totalorder %s431_s14, 1  ;;  %s431_s14 = sphi %s458_s14, %s13_s14   ;;  %s427_s13 = sphi %s456_s13, %s505_s13   ;;  %s423_s12 = sphi %s454_s12, %s504_s12  }
   0x3   : > { %p27_p1 = scmp.ge.s32.totalorder %s25_s15, 2  ;;  %p158_p2 = scmp.lt.s32.totalorder %s431_s14, 3 }
   0x5   : > { %s507_s15 = smov (%p27_p1, %s25_s15), 0  ;;  %p159_p3 = pnand %p370_p0, %p158_p2 }
   0x6   : > { %v261_v0 = vld [vmem:[%s501_s1] sm:$0x7f] (!%p159_p3)  ;;  %v433_v1 = vmov (!%p159_p3), 0   ;;  %p191_p4 = scmp.lt.s32.totalorder (!%p159_p3), %s423_s12, 1  ;;  %vm212_vm0 = vcmask (!%p159_p3), 1046528  }
   0x7   : > { %162 = sbr.rel (%p159_p3) target bundleno = 143 (0x8f), region = 32  ;;  %404 = vset.pattern.permute.xlu0 (!%p159_p3), %v433_v1  ;;  %v269_v2 = vld [vmem:[%s502_s2] sm:$0x7f] (!%p159_p3) }
   0x8   : > { %264 = vperm.xlu0 (!%p159_p3), %404, %v261_v0  }
   0xc   : > { %272 = vperm.xlu0 (!%p159_p3), %404, %v269_v2  }
   0xe   : > { %s509_s12 = smov (!%p191_p4, %s423_s12), 1 }
   0xf   : > { %s377_s20 = sshll.u32 %s509_s12, 4 }
  0x10   : > { %s198_s23 = scalar_lea.vmem %s500_s0, %s377_s20  ;;  %s208_s26 = scalar_lea.vmem %s503_s3, %s377_s20 }
  0x11   : > { %v210_v3 = vld [vmem:[%s198_s23] sm:$0x7f]  ;;  %v211_v4 = vld [vmem:[%s198_s23 + $0x8] sm:$0x7f] }
  0x12   : > { %v213_v5 = vsel %vm212_vm0, %v210_v3, 0.0  ;;  %v227_v6 = vmul.f32 %v210_v3, %v210_v3  ;;  %v220_v7 = vsel %vm212_vm0, %v211_v4, 0.0  ;;  %v228_v8 = vmul.f32 %v211_v4, %v211_v4 }
  0x13   : > { %v214_v9 = vrot.slane %v213_v5, 4  ;;  %v221_v10 = vrot.slane %v220_v7, 4 }
  0x14   : > { %v229_v11 = vsel %vm212_vm0, %v227_v6, 0.0  ;;  %v236_v12 = vsel %vm212_vm0, %v228_v8, 0.0 }
  0x15   : > { %v215_v13 = vadd.f32 %v214_v9, %v213_v5  ;;  %v230_v14 = vrot.slane %v229_v11, 4  ;;  %v222_v15 = vadd.f32 %v221_v10, %v220_v7  ;;  %v237_v16 = vrot.slane %v236_v12, 4 }
  0x17   : > { %v216_v17 = vrot.slane %v215_v13, 2  ;;  %v231_v18 = vadd.f32 %v230_v14, %v229_v11  ;;  %v223_v19 = vrot.slane %v222_v15, 2  ;;  %v238_v20 = vadd.f32 %v237_v16, %v236_v12 }
  0x19   : > { %v217_v21 = vadd.f32 %v216_v17, %v215_v13  ;;  %v232_v22 = vrot.slane %v231_v18, 2  ;;  %v224_v23 = vadd.f32 %v223_v19, %v222_v15  ;;  %v239_v24 = vrot.slane %v238_v20, 2 }
  0x1b   : > { %v218_v25 = vrot.slane %v217_v21, 1  ;;  %v233_v26 = vadd.f32 %v232_v22, %v231_v18  ;;  %v225_v27 = vrot.slane %v224_v23, 1  ;;  %v240_v28 = vadd.f32 %v239_v24, %v238_v20 }
  0x1d   : > { %v219_v29 = vadd.f32 %v218_v25, %v217_v21  ;;  %v234_v30 = vrot.slane %v233_v26, 1  ;;  %v226_v31 = vadd.f32 %v225_v27, %v224_v23  ;;  %v241_v32 = vrot.slane %v240_v28, 1 }
  0x1f   : > { %v235_v33 = vadd.f32 %v234_v30, %v233_v26  ;;  %v243_v34 = vmul.f32 0.14285715, %v219_v29  ;;  %v242_v35 = vadd.f32 %v241_v32, %v240_v28  ;;  %v244_v36 = vmul.f32 0.14285715, %v226_v31 }
  0x21   : > { %v245_v37 = vmul.f32 0.14285715, %v235_v33  ;;  %v247_v38 = vmul.f32 %v243_v34, %v243_v34  ;;  %v246_v39 = vmul.f32 0.14285715, %v242_v35  ;;  %v248_v40 = vmul.f32 %v244_v36, %v244_v36 }
  0x22   : > { %v257_v48 = vsub.f32 %v210_v3, %v243_v34  ;;  %v258_v49 = vsub.f32 %v211_v4, %v244_v36 }
  0x23   : > { %v249_v41 = vsub.f32 %v245_v37, %v247_v38  ;;  %v250_v42 = vsub.f32 %v246_v39, %v248_v40 }
  0x25   : > { %v251_v43 = vmax.f32 %v249_v41, 0.0  ;;  %v252_v44 = vmax.f32 %v250_v42, 0.0 }
  0x27   : > { %v253_v45 = vadd.f32 1e-06, %v251_v43  ;;  %v254_v46 = vadd.f32 1e-06, %v252_v44 }
  0x29   : > { %405 = vrsqrt.f32 %v253_v45 }
  0x2a   : > { %407 = vrsqrt.f32 %v254_v46 }
  0x33   : > { %v406_v47 = vpop.eup %405 }
  0x34   : > { %v408_v50 = vpop.eup %407  ;;  %v259_v51 = vmul.f32 %v406_v47, %v257_v48 }
  0x35   : > { %v260_v52 = vmul.f32 %v408_v50, %v258_v49 }
  0x87   : > { %v265_v53 = vpop.permute.xlu0 %264 }
  0x88   : > { %v267_v54 = vmul.f32 %v265_v53, %v259_v51  ;;  %v268_v55 = vmul.f32 %v265_v53, %v260_v52 }
  0x8b   : > { %v273_v56 = vpop.permute.xlu0 %272 }
  0x8c   : > { %v275_v57 = vadd.f32 %v273_v56, %v267_v54  ;;  %v276_v58 = vadd.f32 %v273_v56, %v268_v55 }
  0x8e   : > { %277 = vst [vmem:[%s208_s26] sm:$0x7f] %v275_v57  ;;  %278 = vst [vmem:[%s208_s26 + $0x8] sm:$0x7f] %v276_v58 }
  0x8f PF: > { %s13_s14 = sadd.s32 1, %s431_s14   ;;  %s504_s12 = smov %s427_s13 }
  0x90   : > { %p10_p5 = scmp.ge.s32.totalorder %s13_s14, 4   ;;  %s505_s13 = smov %s507_s15 }
  0x92   :  { %12 = sbr.rel (!%p10_p5) target bundleno = 2 (0x2), region = 62 }

</bundles_post_ra>
